<compile_context>
chip_gen: v5e
topology: v5e:2x2
jax: 0.10.0
libtpu: 0.0.40
codegen_flags: <defaults>
</compile_context>

<pallas_src>
import functools

import jax
import jax.numpy as jnp
import numpy as np
from jax.experimental import pallas as pl
from jax.experimental.pallas import tpu as pltpu


def _round_up(x, m):
    return (x + m - 1) // m * m


def _cdiv(a, b):
    return (a + b - 1) // b


def _vmem_limit_bytes():
    """Generation-aware scoped-VMEM limit (96 MiB on v5e/v6e, 48 MiB on v7x)."""
    cap = 64 * 1024 * 1024
    try:
        cap = int(pltpu.get_tpu_info().vmem_capacity_bytes)
    except Exception:
        pass
    return int(min(cap * 3 // 4, 96 * 1024 * 1024))


# --------------------------------------------------------------------------
# Phase 1: conv matmul (bf16 MXU inputs, f32 result) + per-M-tile channel
# sum / sum-of-squares partials.
# Grid = (oc_tiles, m_tiles); every output block is written exactly once, so
# both axes are "parallel" (megacore can shard the M axis even when n_oc==1).
# The (Kp, oc_tile) weight slab has a constant index over the M axis, so it is
# DMA'd once per OC tile and stays resident while the patch matrix streams.
# --------------------------------------------------------------------------
def conv_stats_kernel(p_ref, w_ref, y_ref, stats_ref):
    y = jnp.dot(p_ref[...], w_ref[...], preferred_element_type=jnp.float32)
    # Per-M-tile partial stats from the f32 result, before the bf16 cast.
    stats_ref[:, 0:1, :] = jnp.sum(y, axis=0, keepdims=True)[None]
    stats_ref[:, 1:2, :] = jnp.sum(y * y, axis=0, keepdims=True)[None]
    y_ref[...] = y.astype(y_ref.dtype)          # bf16 lane-dense writeback


# --------------------------------------------------------------------------
# Phase 2: out = act(y * scale + bias), stored transposed as (OCp, Mp) so the
# remaining XLA permute to NCHW touches only major dims.  Mem-bound; the
# in-kernel transpose rides the otherwise-idle XLU slot.
# --------------------------------------------------------------------------
def bn_act_kernel(y_ref, scale_ref, bias_ref, o_ref, *, activation):
    out = y_ref[...].astype(jnp.float32) * scale_ref[...] + bias_ref[...]
    if activation == "relu":
        out = jnp.maximum(out, 0.0)
    elif activation == "leaky_relu":
        out = jnp.where(out >= 0.0, out, 0.01 * out)
    elif activation == "selu":
        alpha = 1.6732632423543772
        scale_c = 1.0507009873554805
        out = scale_c * jnp.where(out > 0.0, out, alpha * (jnp.exp(out) - 1.0))
    # 'none' -> identity
    o_ref[...] = out.T.astype(o_ref.dtype)


def conv_block_forward(x, weight, gamma, beta, *, stride=1, dilation=1,
                       padding=0, eps=1e-5, activation="relu", block_m=1024):
    """Pallas implementation of ConvBlock.forward.  x: NCHW, weight: OIHW."""
    N, C, H, W = x.shape
    OC, _, kh, kw = weight.shape
    lane = 128

    # ---- im2col: bf16, feature-last, feature ordered (C, kh, kw) to match
    # PyTorch's weight.reshape(OC, C*kh*kw).
    # TODO(synk): for stride==1 the kh*kw taps could be folded into an
    # in-kernel reduction over shifted NHWC views to avoid the kh*kw-times
    # larger im2col matrix in HBM entirely.
    patches = jax.lax.conv_general_dilated_patches(
        x.astype(jnp.bfloat16), filter_shape=(kh, kw),
        window_strides=(stride, stride),
        padding=[(padding, padding), (padding, padding)],
        rhs_dilation=(dilation, dilation),
        dimension_numbers=("NCHW", "OIHW", "NHWC"))     # (N, OH, OW, C*kh*kw)
    _, OH, OW, K = patches.shape
    M = N * OH * OW
    patches = patches.reshape(M, K)

    # ---- tile sizing against a generation-aware VMEM budget -----------------
    vmem_limit = _vmem_limit_bytes()
    budget = int(vmem_limit * 0.7)          # headroom for compiler scratch etc.

    Kp = _round_up(K, lane)
    OCp = _round_up(OC, lane)

    # OC tile: whole (Kp, oc_tile) weight slab stays resident (shrink if K huge).
    oc_tile = min(OCp, 512)
    while oc_tile > lane and 2 * Kp * oc_tile * 2 > budget // 2:
        oc_tile //= 2
    OCp = _round_up(OCp, oc_tile)
    n_oc = OCp // oc_tile

    def p1_bytes(mt):   # double-buffered: patches + weight + y + stats
        return (2 * mt * Kp * 2 + 2 * Kp * oc_tile * 2
                + 2 * mt * oc_tile * 2 + 2 * 2 * oc_tile * 4)

    def p2_bytes(mt):   # double-buffered: y in (bf16) + out (f32) + scale/bias
        return 2 * mt * OCp * 2 + 2 * OCp * mt * 4 + 4 * OCp * 4

    m_tile = max(lane, _round_up(min(block_m, M), lane))
    while m_tile > lane and max(p1_bytes(m_tile), p2_bytes(m_tile)) > budget:
        m_tile //= 2
    # Tight M padding: split M as evenly as possible, rounded to 128 (m_tile is
    # also the lane dim of the transposed phase-2 output block).
    n_m = _cdiv(M, m_tile)
    m_tile = _round_up(_cdiv(M, n_m), lane)
    Mp = m_tile * n_m
    # TODO(synk): K so large that a (128, Kp) patch tile overflows the budget
    # would need a K grid axis; unreachable for realistic ConvBlock shapes.

    # Zero padding is numerically inert: padded rows/cols contribute exact
    # zeros to the matmul and to sum / sum-of-squares; the mean/var divide by
    # the real M below.
    patches_p = jnp.pad(patches, ((0, Mp - M), (0, Kp - K)))
    w_p = jnp.pad(weight.reshape(OC, K).T.astype(jnp.bfloat16),
                  ((0, Kp - K), (0, OCp - OC)))

    # ---------------- phase 1: conv matmul + per-tile channel stats ----------
    y, stats = pl.pallas_call(
        conv_stats_kernel,
        out_shape=(jax.ShapeDtypeStruct((Mp, OCp), jnp.bfloat16),
                   jax.ShapeDtypeStruct((n_m, 2, OCp), jnp.float32)),
        grid=(n_oc, n_m),
        in_specs=[
            pl.BlockSpec((m_tile, Kp), lambda j, m: (m, 0)),
            pl.BlockSpec((Kp, oc_tile), lambda j, m: (0, j)),   # resident per j
        ],
        out_specs=(
            pl.BlockSpec((m_tile, oc_tile), lambda j, m: (m, j)),
            pl.BlockSpec((1, 2, oc_tile), lambda j, m: (m, 0, j)),
        ),
        compiler_params=pltpu.CompilerParams(
            dimension_semantics=("parallel", "parallel"),
            vmem_limit_bytes=vmem_limit),
    )(patches_p, w_p)

    # ---------------- fold BN into per-channel scale / bias ------------------
    # Tiny (n_m, OCp) reduction of the partials; biased variance over the real
    # M = N*OH*OW elements (training-mode BatchNorm statistics).
    csum = jnp.sum(stats[:, 0, :], axis=0)
    csq = jnp.sum(stats[:, 1, :], axis=0)
    mean = csum / M
    var = jnp.maximum(csq / M - mean * mean, 0.0)
    gamma_p = jnp.pad(gamma.astype(jnp.float32), (0, OCp - OC))
    beta_p = jnp.pad(beta.astype(jnp.float32), (0, OCp - OC))
    scale_v = gamma_p * jax.lax.rsqrt(var + eps)
    bias_v = beta_p - mean * scale_v
    scale = scale_v.reshape(1, OCp)
    bias = bias_v.reshape(1, OCp)
    # TODO(synk): BatchNorm2d running_mean/running_var/num_batches_tracked
    # training-time side effects are not reproduced; only the forward output.

    # ---------------- phase 2: normalize + activation + in-kernel transpose --
    out_t = pl.pallas_call(
        functools.partial(bn_act_kernel, activation=activation),
        out_shape=jax.ShapeDtypeStruct((OCp, Mp), jnp.float32),
        grid=(n_m,),
        in_specs=[
            pl.BlockSpec((m_tile, OCp), lambda m: (m, 0)),
            pl.BlockSpec((1, OCp), lambda m: (0, 0)),   # fetched once
            pl.BlockSpec((1, OCp), lambda m: (0, 0)),   # fetched once
        ],
        out_specs=pl.BlockSpec((OCp, m_tile), lambda m: (0, m)),
        compiler_params=pltpu.CompilerParams(
            dimension_semantics=("parallel",),
            vmem_limit_bytes=vmem_limit),
    )(y, scale, bias)

    # Remaining XLA permute touches only major dims (OW stays the lane dim).
    out = out_t[:OC, :M].reshape(OC, N, OH, OW)
    return out.transpose(1, 0, 2, 3)


if __name__ == "__main__":
    # Small shapes consistent with the module: batch=2, C_in=4, H=W=16.
    N, C_in, C_out, H, W = 2, 4, 8, 16, 16
    kernel_size, stride, dilation, padding = 3, 1, 1, 1
    eps = 1e-5
    activation = "relu"

    key = jax.random.PRNGKey(0)
    kx, kw_ = jax.random.split(key)
    x = jax.random.normal(kx, (N, C_in, H, W), dtype=jnp.float32)
    weight = jax.random.normal(kw_, (C_out, C_in, kernel_size, kernel_size),
                               dtype=jnp.float32) * 0.1
    gamma = jnp.ones((C_out,), dtype=jnp.float32)   # BatchNorm2d default init
    beta = jnp.zeros((C_out,), dtype=jnp.float32)

    # block_m=256 so the toy problem (M = 2*16*16 = 512) exercises the
    # multi-M-tile partial-stats reduction path.
    fwd = jax.jit(functools.partial(
        conv_block_forward, stride=stride, dilation=dilation, padding=padding,
        eps=eps, activation=activation, block_m=256))

    y = fwd(x, weight, gamma, beta)
    jax.block_until_ready(y)

    # Reference: plain-JAX f32 conv + training-mode BN + ReLU.
    ref_conv = jax.lax.conv_general_dilated(
        x, weight, window_strides=(stride, stride),
        padding=[(padding, padding), (padding, padding)],
        rhs_dilation=(dilation, dilation),
        dimension_numbers=("NCHW", "OIHW", "NCHW"),
        precision=jax.lax.Precision.HIGHEST)
    mu = ref_conv.mean(axis=(0, 2, 3), keepdims=True)
    var = ((ref_conv - mu) ** 2).mean(axis=(0, 2, 3), keepdims=True)
    ref = (ref_conv - mu) / jnp.sqrt(var + eps)
    ref = ref * gamma.reshape(1, -1, 1, 1) + beta.reshape(1, -1, 1, 1)
    ref = jnp.maximum(ref, 0.0)

    np.testing.assert_allclose(np.asarray(y), np.asarray(ref),
                               atol=3e-2, rtol=3e-2)
    print("KERNEL_OK")
</pallas_src>

<mosaic_0001>
module attributes {stable_mosaic.version = 11 : i64} {
  func.func @conv_stats_kernel(%arg0: i32, %arg1: i32, %arg2: memref<256x128xbf16, #tpu.memory_space<vmem>>, %arg3: memref<128x128xbf16, #tpu.memory_space<vmem>>, %arg4: memref<256x128xbf16, #tpu.memory_space<vmem>>, %arg5: memref<1x2x128xf32, #tpu.memory_space<vmem>>) attributes {dimension_semantics = [#tpu.dimension_semantics<parallel>, #tpu.dimension_semantics<parallel>], iteration_bounds = array<i64: 1, 2>, scalar_prefetch = 0 : i64, scratch_operands = 0 : i64, tpu.core_type = #tpu.core_type<tc>, window_params = [{transform_indices = @transform_0, window_bounds = array<i64: 256, 128>}, {transform_indices = @transform_1, window_bounds = array<i64: 128, 128>}, {transform_indices = @transform_2, window_bounds = array<i64: 256, 128>}, {transform_indices = @transform_3, window_bounds = array<i64: 1, 2, 128>}]} {
    %c0 = arith.constant 0 : index
    %c0_0 = arith.constant 0 : index
    %0 = vector.load %arg2[%c0, %c0_0] : memref<256x128xbf16, #tpu.memory_space<vmem>>, vector<256x128xbf16>
    %c0_1 = arith.constant 0 : index
    %c0_2 = arith.constant 0 : index
    %1 = vector.load %arg3[%c0_1, %c0_2] : memref<128x128xbf16, #tpu.memory_space<vmem>>, vector<128x128xbf16>
    %cst = arith.constant dense<0.000000e+00> : vector<256x128xf32>
    %2 = tpu.matmul %0, %1, %cst {dimension_numbers = #tpu.dot_dimension_numbers<[1], [0], [0], [1], [0, 0, 1, 1], [], []>} : vector<256x128xbf16>, vector<128x128xbf16>, vector<256x128xf32> -> vector<256x128xf32>
    %cst_3 = arith.constant dense<0.000000e+00> : vector<128xf32>
    %3 = vector.multi_reduction <add>, %2, %cst_3 [0] : vector<256x128xf32> to vector<128xf32>
    %4 = vector.shape_cast %3 : vector<128xf32> to vector<1x128xf32>
    %5 = vector.shape_cast %4 : vector<1x128xf32> to vector<1x1x128xf32>
    %c0_4 = arith.constant 0 : index
    %c0_5 = arith.constant 0 : index
    %c0_6 = arith.constant 0 : index
    %6 = vector.load %arg5[%c0_4, %c0_5, %c0_6] : memref<1x2x128xf32, #tpu.memory_space<vmem>>, vector<1x1x128xf32>
    tpu.vector_store %arg5[%c0_4, %c0_5, %c0_6], %5 {strides = array<i32>} : memref<1x2x128xf32, #tpu.memory_space<vmem>>, vector<1x1x128xf32>,
    %7 = arith.mulf %2, %2 : vector<256x128xf32>
    %cst_7 = arith.constant dense<0.000000e+00> : vector<128xf32>
    %8 = vector.multi_reduction <add>, %7, %cst_7 [0] : vector<256x128xf32> to vector<128xf32>
    %9 = vector.shape_cast %8 : vector<128xf32> to vector<1x128xf32>
    %10 = vector.shape_cast %9 : vector<1x128xf32> to vector<1x1x128xf32>
    %c0_8 = arith.constant 0 : index
    %c1 = arith.constant 1 : index
    %c0_9 = arith.constant 0 : index
    %11 = vector.load %arg5[%c0_8, %c1, %c0_9] : memref<1x2x128xf32, #tpu.memory_space<vmem>>, vector<1x1x128xf32>
    tpu.vector_store %arg5[%c0_8, %c1, %c0_9], %10 {strides = array<i32>} : memref<1x2x128xf32, #tpu.memory_space<vmem>>, vector<1x1x128xf32>,
    %12 = arith.truncf %2 : vector<256x128xf32> to vector<256x128xbf16>
    %c0_10 = arith.constant 0 : index
    %c0_11 = arith.constant 0 : index
    %13 = vector.load %arg4[%c0_10, %c0_11] : memref<256x128xbf16, #tpu.memory_space<vmem>>, vector<256x128xbf16>
    tpu.vector_store %arg4[%c0_10, %c0_11], %12 {strides = array<i32>} : memref<256x128xbf16, #tpu.memory_space<vmem>>, vector<256x128xbf16>,
    return
  }
  func.func @transform_0(%arg0: i32, %arg1: i32) -> (i32, i32) {
    %c0_i32 = arith.constant 0 : i32
    %c0_i32_0 = arith.constant 0 : i32
    return %arg1, %c0_i32 : i32, i32
  }
  func.func @transform_1(%arg0: i32, %arg1: i32) -> (i32, i32) {
    %c0_i32 = arith.constant 0 : i32
    %c0_i32_0 = arith.constant 0 : i32
    return %c0_i32, %arg0 : i32, i32
  }
  func.func @transform_2(%arg0: i32, %arg1: i32) -> (i32, i32) {
    %c0_i32 = arith.constant 0 : i32
    return %arg1, %arg0 : i32, i32
  }
  func.func @transform_3(%arg0: i32, %arg1: i32) -> (i32, i32, i32) {
    %c0_i32 = arith.constant 0 : i32
    %c0_i32_0 = arith.constant 0 : i32
    return %arg1, %c0_i32, %arg0 : i32, i32, i32
  }
}

module attributes {stable_mosaic.version = 11 : i64} {
  func.func @bn_act_kernel(%arg0: i32, %arg1: memref<256x128xbf16, #tpu.memory_space<vmem>>, %arg2: memref<1x128xf32, #tpu.memory_space<vmem>>, %arg3: memref<1x128xf32, #tpu.memory_space<vmem>>, %arg4: memref<128x256xf32, #tpu.memory_space<vmem>>) attributes {dimension_semantics = [#tpu.dimension_semantics<parallel>], iteration_bounds = array<i64: 2>, scalar_prefetch = 0 : i64, scratch_operands = 0 : i64, tpu.core_type = #tpu.core_type<tc>, window_params = [{transform_indices = @transform_0, window_bounds = array<i64: 256, 128>}, {pipeline_mode = #tpu.pipeline_mode<synchronous>, transform_indices = @transform_1, window_bounds = array<i64: 1, 128>}, {pipeline_mode = #tpu.pipeline_mode<synchronous>, transform_indices = @transform_2, window_bounds = array<i64: 1, 128>}, {transform_indices = @transform_3, window_bounds = array<i64: 128, 256>}]} {
    %c0 = arith.constant 0 : index
    %c0_0 = arith.constant 0 : index
    %0 = vector.load %arg1[%c0, %c0_0] : memref<256x128xbf16, #tpu.memory_space<vmem>>, vector<256x128xbf16>
    %1 = arith.extf %0 : vector<256x128xbf16> to vector<256x128xf32>
    %c0_1 = arith.constant 0 : index
    %c0_2 = arith.constant 0 : index
    %2 = vector.load %arg2[%c0_1, %c0_2] : memref<1x128xf32, #tpu.memory_space<vmem>>, vector<1x128xf32>
    %3 = vector.broadcast %2 : vector<1x128xf32> to vector<256x128xf32>
    %4 = arith.mulf %1, %3 : vector<256x128xf32>
    %c0_3 = arith.constant 0 : index
    %c0_4 = arith.constant 0 : index
    %5 = vector.load %arg3[%c0_3, %c0_4] : memref<1x128xf32, #tpu.memory_space<vmem>>, vector<1x128xf32>
    %6 = vector.broadcast %5 : vector<1x128xf32> to vector<256x128xf32>
    %7 = arith.addf %4, %6 : vector<256x128xf32>
    %cst = arith.constant 0.000000e+00 : f32
    %8 = vector.broadcast %cst : f32 to vector<256x128xf32>
    %9 = arith.maximumf %7, %8 : vector<256x128xf32>
    %10 = tpu.transpose %9, [1, 0] : vector<256x128xf32> -> vector<128x256xf32>
    %c0_5 = arith.constant 0 : index
    %c0_6 = arith.constant 0 : index
    %11 = vector.load %arg4[%c0_5, %c0_6] : memref<128x256xf32, #tpu.memory_space<vmem>>, vector<128x256xf32>
    tpu.vector_store %arg4[%c0_5, %c0_6], %10 {strides = array<i32>} : memref<128x256xf32, #tpu.memory_space<vmem>>, vector<128x256xf32>,
    return
  }
  func.func @transform_0(%arg0: i32) -> (i32, i32) {
    %c0_i32 = arith.constant 0 : i32
    %c0_i32_0 = arith.constant 0 : i32
    return %arg0, %c0_i32 : i32, i32
  }
  func.func @transform_1(%arg0: i32) -> (i32, i32) {
    %c0_i32 = arith.constant 0 : i32
    %c0_i32_0 = arith.constant 0 : i32
    %c0_i32_1 = arith.constant 0 : i32
    return %c0_i32, %c0_i32_0 : i32, i32
  }
  func.func @transform_2(%arg0: i32) -> (i32, i32) {
    %c0_i32 = arith.constant 0 : i32
    %c0_i32_0 = arith.constant 0 : i32
    %c0_i32_1 = arith.constant 0 : i32
    return %c0_i32, %c0_i32_0 : i32, i32
  }
  func.func @transform_3(%arg0: i32) -> (i32, i32) {
    %c0_i32 = arith.constant 0 : i32
    %c0_i32_0 = arith.constant 0 : i32
    return %c0_i32, %arg0 : i32, i32
  }
}

</mosaic_0001>

<bundles_post_ra>
// kernel: conv_block_forward.3
= control target key start
LH: loop header
LB: loop body
LE: loop exit
PB: predicated region body
PF: predicated region fallthrough
CT: control target
= control target key end

     0   :  { %s734_s12 = smov 0   ;;  %s736_s13 = smov 0   ;;  %s976_s0 = inlined_call_operand.vmem [shape: bf16[512,128], index: 0, kind: input, shape index: {}]   ;;  %s977_s1 = inlined_call_operand.vmem [shape: f32[1,128], index: 1, kind: input, shape index: {}]   ;;  %s978_s2 = inlined_call_operand.vmem [shape: f32[1,128], index: 2, kind: input, shape index: {}]   ;;  %s979_s3 = inlined_call_operand.vmem [shape: f32[128,512], index: 3, kind: output, shape index: {}]  }
   0x1   :  { %s738_s14 = smov 0  }
   0x2 LB: > { %s747_s15 = sadd.s32 4294967295, %s712_s14   ;;  %s749_s16 = sadd.s32 1, %s712_s14   ;;  %s712_s14 = sphi %s738_s14, %s983_s14   ;;  %s708_s13 = sphi %s736_s13, %s982_s13   ;;  %s704_s12 = sphi %s734_s12, %s981_s12  }
   0x3   : > { %s85_s17 = ssub.s32 %s712_s14, %s749_s16  ;;  %s88_s18 = sadd.s32 1, %s708_s13 }
   0x4   : > { %p86_p0 = scmp.eq.s32.totalorder %s85_s17, 0  ;;  %p98_p1 = scmp.ne.s32.totalorder %s708_s13, %s704_s12 }
   0x5   : > { %p99_p2 = scmp.eq.s32.totalorder %s747_s15, 1  ;;  %p575_p3 = scmp.ge.s32.totalorder %s712_s14, 1 }
   0x6   : > { %s757_s19 = scalar_select %p86_p0, %s708_s13, %s88_s18  }
   0x7   : > { %p759_p4 = por %p99_p2, %p98_p1  ;;  %p138_p5 = scmp.lt.s32.totalorder %s712_s14, 3 }
   0x9   : > { %p139_p6 = pnand %p575_p3, %p138_p5 }
   0xa   : > { %s577_s21 = sshll.u32 (!%p139_p6), %s747_s15, 5  ;;  %s158_s30 = sand.u32 (!%p139_p6), 1, %s704_s12  }
   0xb   : > { %142 = sbr.rel (%p139_p6) target bundleno = 323 (0x143), region = 32  ;;  %p162_p7 = scmp.lt.s32.totalorder (!%p139_p6), %s577_s21, 63 }
   0xc   : > { %s576_s4 = sshll.u32 (!%p139_p6), %s158_s30, 8 }
   0xd   : > { %s860_s5 = scalar_lea.vmem (!%p139_p6), [#allocation2], %s576_s4 }
  0x10   : > { %s985_s21 = smov (!%p162_p7, %s577_s21), 63  ;;  %v772_v0 = vld [vmem:[%s977_s1] ss:$0 sm:$0xff]  ;;  %s584_s6 = sshll.u32 (%p759_p4), %s747_s15, 4 }
  0x11   : > { %s578_s22 = sshll.u32 %s985_s21, 2  ;;  %v779_v4 = vld [vmem:[%s978_s2] ss:$0 sm:$0xff]  ;;  %s902_s9 = scalar_lea.vmem (%p759_p4), %s979_s3, %s584_s6 }
  0x12   : > { %s767_s25 = scalar_lea.vmem %s976_s0, %s578_s22 }
  0x13   : > { %v656_v1 = vld [vmem:[%s767_s25 + $0x40] sm:$0xff]   ;;  %v657_v14 = vld [vmem:[%s767_s25 + $0x48] sm:$0xff]   ;;  %v658_v34 = vld [vmem:[%s767_s25 + $0x50] sm:$0xff]  }
  0x14   : > { %v586_v2 = vld [vmem:[%s767_s25] sm:$0xff]   ;;  %v619_v3 = vunpack.c.l.bf16 %v656_v1  ;;  %v620_v6 = vunpack.c.h.bf16 %v656_v1  ;;  %v649_v15 = vld [vmem:[%s767_s25 + $0x8] sm:$0xff]   ;;  %v623_v20 = vunpack.c.l.bf16 %v657_v14  ;;  %v624_v28 = vunpack.c.h.bf16 %v657_v14  ;;  %v650_v35 = vld [vmem:[%s767_s25 + $0x10] sm:$0xff]  }
  0x15   : > { %v587_v5 = vunpack.c.l.bf16 %v586_v2  ;;  %v588_v7 = vunpack.c.h.bf16 %v586_v2  ;;  %v591_v21 = vunpack.c.l.bf16 %v649_v15  ;;  %v592_v29 = vunpack.c.h.bf16 %v649_v15  ;;  %v659_v52 = vld [vmem:[%s767_s25 + $0x58] sm:$0xff]  }
  0x16   : > { %v252_v8 = vmul.f32 %v772_v0, %v619_v3  ;;  %v253_v12 = vmul.f32 %v772_v0, %v620_v6  ;;  %v254_v24 = vmul.f32 %v772_v0, %v623_v20  ;;  %v255_v32 = vmul.f32 %v772_v0, %v624_v28  ;;  %v651_v53 = vld [vmem:[%s767_s25 + $0x18] sm:$0xff]  }
  0x17   : > { %v236_v9 = vmul.f32 %v772_v0, %v587_v5  ;;  %v237_v13 = vmul.f32 %v772_v0, %v588_v7  ;;  %v238_v25 = vmul.f32 %v772_v0, %v591_v21  ;;  %v239_v33 = vmul.f32 %v772_v0, %v592_v29 }
  0x18   : > { %v288_v10 = vadd.f32 %v779_v4, %v252_v8  ;;  %v289_v18 = vadd.f32 %v779_v4, %v253_v12  ;;  %v290_v26 = vadd.f32 %v779_v4, %v254_v24  ;;  %v291_v36 = vadd.f32 %v779_v4, %v255_v32  ;;  %v660_v8 = vld [vmem:[%s767_s25 + $0x60] sm:$0xff]  }
  0x19   : > { %v272_v11 = vadd.f32 %v779_v4, %v236_v9  ;;  %v273_v19 = vadd.f32 %v779_v4, %v237_v13  ;;  %v274_v27 = vadd.f32 %v779_v4, %v238_v25  ;;  %v275_v37 = vadd.f32 %v779_v4, %v239_v33  ;;  %v652_v9 = vld [vmem:[%s767_s25 + $0x20] sm:$0xff]  }
  0x1a   : > { %v320_v16 = vmax.f32 %v288_v10, 0.0  ;;  %v321_v22 = vmax.f32 %v289_v18, 0.0  ;;  %v322_v30 = vmax.f32 %v290_v26, 0.0  ;;  %v627_v38 = vunpack.c.l.bf16 %v658_v34  ;;  %v661_v26 = vld [vmem:[%s767_s25 + $0x68] sm:$0xff]  }
  0x1b   : > { %v304_v17 = vmax.f32 %v272_v11, 0.0  ;;  %v305_v23 = vmax.f32 %v273_v19, 0.0  ;;  %v306_v31 = vmax.f32 %v274_v27, 0.0  ;;  %v595_v39 = vunpack.c.l.bf16 %v650_v35  ;;  %v653_v27 = vld [vmem:[%s767_s25 + $0x28] sm:$0xff]  }
  0x1c   : > { %368 = vxpose.xlu1.b32.start [1/16] %v320_v16, 128  ;;  %v323_v40 = vmax.f32 %v291_v36, 0.0  ;;  %v307_v41 = vmax.f32 %v275_v37, 0.0  ;;  %v256_v42 = vmul.f32 %v772_v0, %v627_v38  ;;  %v628_v46 = vunpack.c.h.bf16 %v658_v34 }
  0x1d   : > { %336 = vxpose.xlu0.b32.start [1/16] %v304_v17, 128  ;;  %v240_v43 = vmul.f32 %v772_v0, %v595_v39  ;;  %v596_v47 = vunpack.c.h.bf16 %v650_v35  ;;  %v631_v56 = vunpack.c.l.bf16 %v659_v52  ;;  %v599_v57 = vunpack.c.l.bf16 %v651_v53 }
  0x1e   : > { %v292_v44 = vadd.f32 %v779_v4, %v256_v42  ;;  %v257_v50 = vmul.f32 %v772_v0, %v628_v46  ;;  %v632_v1 = vunpack.c.h.bf16 %v659_v52  ;;  %v600_v2 = vunpack.c.h.bf16 %v651_v53 }
  0x1f   : > { %v276_v45 = vadd.f32 %v779_v4, %v240_v43  ;;  %v241_v51 = vmul.f32 %v772_v0, %v596_v47  ;;  %v258_v60 = vmul.f32 %v772_v0, %v631_v56  ;;  %v242_v61 = vmul.f32 %v772_v0, %v599_v57 }
  0x20   : > { %v324_v48 = vmax.f32 %v292_v44, 0.0  ;;  %v293_v54 = vadd.f32 %v779_v4, %v257_v50  ;;  %v259_v6 = vmul.f32 %v772_v0, %v632_v1  ;;  %v243_v7 = vmul.f32 %v772_v0, %v600_v2  ;;  %v662_v44 = vld [vmem:[%s767_s25 + $0x70] sm:$0xff]  }
  0x21   : > { %v308_v49 = vmax.f32 %v276_v45, 0.0  ;;  %v277_v55 = vadd.f32 %v779_v4, %v241_v51  ;;  %v294_v62 = vadd.f32 %v779_v4, %v258_v60  ;;  %v278_v63 = vadd.f32 %v779_v4, %v242_v61  ;;  %v654_v45 = vld [vmem:[%s767_s25 + $0x30] sm:$0xff]  }
  0x22   : > { %v325_v58 = vmax.f32 %v293_v54, 0.0  ;;  %v295_v10 = vadd.f32 %v779_v4, %v259_v6  ;;  %v279_v11 = vadd.f32 %v779_v4, %v243_v7  ;;  %v635_v12 = vunpack.c.l.bf16 %v660_v8 }
  0x23   : > { %v309_v59 = vmax.f32 %v277_v55, 0.0  ;;  %v326_v3 = vmax.f32 %v294_v62, 0.0  ;;  %v310_v5 = vmax.f32 %v278_v63, 0.0  ;;  %v603_v13 = vunpack.c.l.bf16 %v652_v9  ;;  %v663_v62 = vld [vmem:[%s767_s25 + $0x78] sm:$0xff]  }
  0x24   : > { %369 = vxpose.xlu1.b32.cont [2/16] %v321_v22, 128  ;;  %v327_v14 = vmax.f32 %v295_v10, 0.0  ;;  %v311_v15 = vmax.f32 %v279_v11, 0.0  ;;  %v260_v16 = vmul.f32 %v772_v0, %v635_v12  ;;  %v636_v20 = vunpack.c.h.bf16 %v660_v8  ;;  %v655_v63 = vld [vmem:[%s767_s25 + $0x38] sm:$0xff]  }
  0x25   : > { %337 = vxpose.xlu0.b32.cont [2/16] %v305_v23, 128  ;;  %v244_v17 = vmul.f32 %v772_v0, %v603_v13  ;;  %v604_v21 = vunpack.c.h.bf16 %v652_v9  ;;  %v640_v38 = vunpack.c.h.bf16 %v661_v26  ;;  %v608_v39 = vunpack.c.h.bf16 %v653_v27 }
  0x26   : > { %v296_v18 = vadd.f32 %v779_v4, %v260_v16  ;;  %v261_v24 = vmul.f32 %v772_v0, %v636_v20  ;;  %v644_v56 = vunpack.c.h.bf16 %v662_v44  ;;  %v612_v57 = vunpack.c.h.bf16 %v654_v45 }
  0x27   : > { %v280_v19 = vadd.f32 %v779_v4, %v244_v17  ;;  %v245_v25 = vmul.f32 %v772_v0, %v604_v21  ;;  %v263_v42 = vmul.f32 %v772_v0, %v640_v38  ;;  %v247_v43 = vmul.f32 %v772_v0, %v608_v39 }
  0x28   : > { %v328_v22 = vmax.f32 %v296_v18, 0.0  ;;  %v297_v28 = vadd.f32 %v779_v4, %v261_v24  ;;  %v265_v60 = vmul.f32 %v772_v0, %v644_v56  ;;  %v249_v61 = vmul.f32 %v772_v0, %v612_v57 }
  0x29   : > { %v312_v23 = vmax.f32 %v280_v19, 0.0  ;;  %v281_v29 = vadd.f32 %v779_v4, %v245_v25  ;;  %v299_v46 = vadd.f32 %v779_v4, %v263_v42  ;;  %v283_v47 = vadd.f32 %v779_v4, %v247_v43 }
  0x2a   : > { %v329_v32 = vmax.f32 %v297_v28, 0.0  ;;  %v301_v1 = vadd.f32 %v779_v4, %v265_v60  ;;  %v285_v2 = vadd.f32 %v779_v4, %v249_v61  ;;  %v648_v12 = vunpack.c.h.bf16 %v663_v62 }
  0x2b   : > { %v313_v33 = vmax.f32 %v281_v29, 0.0  ;;  %v331_v50 = vmax.f32 %v299_v46, 0.0  ;;  %v315_v51 = vmax.f32 %v283_v47, 0.0  ;;  %v616_v13 = vunpack.c.h.bf16 %v655_v63 }
  0x2c   : > { %370 = vxpose.xlu1.b32.cont [3/16] %v322_v30, 128  ;;  %v639_v30 = vunpack.c.l.bf16 %v661_v26  ;;  %v333_v6 = vmax.f32 %v301_v1, 0.0  ;;  %v317_v7 = vmax.f32 %v285_v2, 0.0  ;;  %v267_v16 = vmul.f32 %v772_v0, %v648_v12 }
  0x2d   : > { %338 = vxpose.xlu0.b32.cont [3/16] %v306_v31, 128  ;;  %v607_v31 = vunpack.c.l.bf16 %v653_v27  ;;  %v251_v17 = vmul.f32 %v772_v0, %v616_v13 }
  0x2e   : > { %v262_v34 = vmul.f32 %v772_v0, %v639_v30  ;;  %v303_v18 = vadd.f32 %v779_v4, %v267_v16 }
  0x2f   : > { %v246_v35 = vmul.f32 %v772_v0, %v607_v31  ;;  %v287_v19 = vadd.f32 %v779_v4, %v251_v17 }
  0x30   : > { %v298_v36 = vadd.f32 %v779_v4, %v262_v34  ;;  %v335_v20 = vmax.f32 %v303_v18, 0.0 }
  0x31   : > { %v282_v37 = vadd.f32 %v779_v4, %v246_v35  ;;  %v319_v21 = vmax.f32 %v287_v19, 0.0 }
  0x34   : > { %371 = vxpose.xlu1.b32.cont [4/16] %v323_v40, 128  ;;  %v330_v40 = vmax.f32 %v298_v36, 0.0 }
  0x35   : > { %339 = vxpose.xlu0.b32.cont [4/16] %v307_v41, 128  ;;  %v314_v41 = vmax.f32 %v282_v37, 0.0 }
  0x3c   : > { %372 = vxpose.xlu1.b32.cont [5/16] %v324_v48, 128  ;;  %v643_v48 = vunpack.c.l.bf16 %v662_v44 }
  0x3d   : > { %340 = vxpose.xlu0.b32.cont [5/16] %v308_v49, 128  ;;  %v611_v49 = vunpack.c.l.bf16 %v654_v45 }
  0x3e   : > { %v264_v52 = vmul.f32 %v772_v0, %v643_v48 }
  0x3f   : > { %v248_v53 = vmul.f32 %v772_v0, %v611_v49 }
  0x40   : > { %v300_v54 = vadd.f32 %v779_v4, %v264_v52 }
  0x41   : > { %v284_v55 = vadd.f32 %v779_v4, %v248_v53 }
  0x44   : > { %373 = vxpose.xlu1.b32.cont [6/16] %v325_v58, 128  ;;  %v332_v58 = vmax.f32 %v300_v54, 0.0 }
  0x45   : > { %341 = vxpose.xlu0.b32.cont [6/16] %v309_v59, 128  ;;  %v316_v59 = vmax.f32 %v284_v55, 0.0 }
  0x4c   : > { %374 = vxpose.xlu1.b32.cont [7/16] %v326_v3, 128  ;;  %v647_v3 = vunpack.c.l.bf16 %v663_v62 }
  0x4d   : > { %342 = vxpose.xlu0.b32.cont [7/16] %v310_v5, 128  ;;  %v615_v5 = vunpack.c.l.bf16 %v655_v63 }
  0x4e   : > { %v266_v8 = vmul.f32 %v772_v0, %v647_v3 }
  0x4f   : > { %v250_v9 = vmul.f32 %v772_v0, %v615_v5 }
  0x50   : > { %v302_v10 = vadd.f32 %v779_v4, %v266_v8 }
  0x51   : > { %v286_v11 = vadd.f32 %v779_v4, %v250_v9 }
  0x54   : > { %375 = vxpose.xlu1.b32.cont [8/16] %v327_v14, 128  ;;  %v334_v14 = vmax.f32 %v302_v10, 0.0 }
  0x55   : > { %343 = vxpose.xlu0.b32.cont [8/16] %v311_v15, 128  ;;  %v318_v15 = vmax.f32 %v286_v11, 0.0 }
  0x5c   : > { %376 = vxpose.xlu1.b32.cont [9/16] %v328_v22, 128 }
  0x5d   : > { %344 = vxpose.xlu0.b32.cont [9/16] %v312_v23, 128 }
  0x64   : > { %377 = vxpose.xlu1.b32.cont [10/16] %v329_v32, 128 }
  0x65   : > { %345 = vxpose.xlu0.b32.cont [10/16] %v313_v33, 128 }
  0x6c   : > { %378 = vxpose.xlu1.b32.cont [11/16] %v330_v40, 128 }
  0x6d   : > { %346 = vxpose.xlu0.b32.cont [11/16] %v314_v41, 128 }
  0x74   : > { %379 = vxpose.xlu1.b32.cont [12/16] %v331_v50, 128 }
  0x75   : > { %347 = vxpose.xlu0.b32.cont [12/16] %v315_v51, 128 }
  0x7c   : > { %380 = vxpose.xlu1.b32.cont [13/16] %v332_v58, 128 }
  0x7d   : > { %348 = vxpose.xlu0.b32.cont [13/16] %v316_v59, 128 }
  0x84   : > { %381 = vxpose.xlu1.b32.cont [14/16] %v333_v6, 128 }
  0x85   : > { %349 = vxpose.xlu0.b32.cont [14/16] %v317_v7, 128 }
  0x8c   : > { %382 = vxpose.xlu1.b32.cont [15/16] %v334_v14, 128 }
  0x8d   : > { %350 = vxpose.xlu0.b32.cont [15/16] %v318_v15, 128 }
  0x94   : > { %383 = vxpose.xlu1.b32.end [16/16] %v335_v20, 128 }
  0x95   : > { %351 = vxpose.xlu0.b32.end [16/16] %v319_v21, 128 }
  0xc0   : > { %v384_v22 = vpop.trf.xlu1 }
  0xc1   : > { %v352_v23 = vpop.trf.xlu0  ;;  %401 = vst [vmem:[%s860_s5 + $0x8] sm:$0xff] %v384_v22 }
  0xc2   : > { %400 = vst [vmem:[%s860_s5] sm:$0xff] %v352_v23 }
  0xc8   : > { %v385_v0 = vpop.trf.xlu1  ;;  %v456_v53 = vld [vmem:[%s860_s5 + $0x8] sm:$0xff] (%p759_p4) }
  0xc9   : > { %v353_v4 = vpop.trf.xlu0  ;;  %403 = vst [vmem:[%s860_s5 + $0x18] sm:$0xff] %v385_v0  ;;  %v454_v52 = vld [vmem:[%s860_s5] sm:$0xff] (%p759_p4) }
  0xca   : > { %402 = vst [vmem:[%s860_s5 + $0x10] sm:$0xff] %v353_v4 }
  0xcb   : > { %455 = vst [vmem:[%s902_s9] sm:$0xff] (%p759_p4), %v454_v52 }
  0xcc   : > { %457 = vst [vmem:[%s902_s9 + $0x8] sm:$0xff] (%p759_p4), %v456_v53 }
  0xd0   : > { %v386_v24 = vpop.trf.xlu1  ;;  %v460_v55 = vld [vmem:[%s860_s5 + $0x18] sm:$0xff] (%p759_p4) }
  0xd1   : > { %v354_v25 = vpop.trf.xlu0  ;;  %405 = vst [vmem:[%s860_s5 + $0x28] sm:$0xff] %v386_v24  ;;  %v458_v54 = vld [vmem:[%s860_s5 + $0x10] sm:$0xff] (%p759_p4) }
  0xd2   : > { %404 = vst [vmem:[%s860_s5 + $0x20] sm:$0xff] %v354_v25 }
  0xd3   : > { %459 = vst [vmem:[%s902_s9 + $0x20] sm:$0xff] (%p759_p4), %v458_v54 }
  0xd4   : > { %461 = vst [vmem:[%s902_s9 + $0x28] sm:$0xff] (%p759_p4), %v460_v55 }
  0xd8   : > { %v387_v26 = vpop.trf.xlu1  ;;  %v464_v57 = vld [vmem:[%s860_s5 + $0x28] sm:$0xff] (%p759_p4) }
  0xd9   : > { %v355_v27 = vpop.trf.xlu0  ;;  %407 = vst [vmem:[%s860_s5 + $0x38] sm:$0xff] %v387_v26  ;;  %v462_v56 = vld [vmem:[%s860_s5 + $0x20] sm:$0xff] (%p759_p4) }
  0xda   : > { %406 = vst [vmem:[%s860_s5 + $0x30] sm:$0xff] %v355_v27 }
  0xdb   : > { %463 = vst [vmem:[%s902_s9 + $0x40] sm:$0xff] (%p759_p4), %v462_v56 }
  0xdc   : > { %465 = vst [vmem:[%s902_s9 + $0x48] sm:$0xff] (%p759_p4), %v464_v57 }
  0xe0   : > { %v388_v28 = vpop.trf.xlu1  ;;  %v468_v59 = vld [vmem:[%s860_s5 + $0x38] sm:$0xff] (%p759_p4) }
  0xe1   : > { %v356_v29 = vpop.trf.xlu0  ;;  %409 = vst [vmem:[%s860_s5 + $0x48] sm:$0xff] %v388_v28  ;;  %v466_v58 = vld [vmem:[%s860_s5 + $0x30] sm:$0xff] (%p759_p4) }
  0xe2   : > { %408 = vst [vmem:[%s860_s5 + $0x40] sm:$0xff] %v356_v29 }
  0xe3   : > { %467 = vst [vmem:[%s902_s9 + $0x60] sm:$0xff] (%p759_p4), %v466_v58 }
  0xe4   : > { %469 = vst [vmem:[%s902_s9 + $0x68] sm:$0xff] (%p759_p4), %v468_v59 }
  0xe8   : > { %v389_v30 = vpop.trf.xlu1  ;;  %v472_v61 = vld [vmem:[%s860_s5 + $0x48] sm:$0xff] (%p759_p4) }
  0xe9   : > { %v357_v31 = vpop.trf.xlu0  ;;  %411 = vst [vmem:[%s860_s5 + $0x58] sm:$0xff] %v389_v30  ;;  %v470_v60 = vld [vmem:[%s860_s5 + $0x40] sm:$0xff] (%p759_p4) }
  0xea   : > { %410 = vst [vmem:[%s860_s5 + $0x50] sm:$0xff] %v357_v31 }
  0xeb   : > { %471 = vst [vmem:[%s902_s9 + $0x80] sm:$0xff] (%p759_p4), %v470_v60 }
  0xec   : > { %473 = vst [vmem:[%s902_s9 + $0x88] sm:$0xff] (%p759_p4), %v472_v61 }
  0xf0   : > { %v390_v32 = vpop.trf.xlu1  ;;  %v476_v63 = vld [vmem:[%s860_s5 + $0x58] sm:$0xff] (%p759_p4) }
  0xf1   : > { %v358_v33 = vpop.trf.xlu0  ;;  %413 = vst [vmem:[%s860_s5 + $0x68] sm:$0xff] %v390_v32  ;;  %v474_v62 = vld [vmem:[%s860_s5 + $0x50] sm:$0xff] (%p759_p4) }
  0xf2   : > { %412 = vst [vmem:[%s860_s5 + $0x60] sm:$0xff] %v358_v33 }
  0xf3   : > { %475 = vst [vmem:[%s902_s9 + $0xa0] sm:$0xff] (%p759_p4), %v474_v62 }
  0xf4   : > { %477 = vst [vmem:[%s902_s9 + $0xa8] sm:$0xff] (%p759_p4), %v476_v63 }
  0xf8   : > { %v391_v34 = vpop.trf.xlu1  ;;  %v480_v2 = vld [vmem:[%s860_s5 + $0x68] sm:$0xff] (%p759_p4) }
  0xf9   : > { %v359_v35 = vpop.trf.xlu0  ;;  %415 = vst [vmem:[%s860_s5 + $0x78] sm:$0xff] %v391_v34  ;;  %v478_v1 = vld [vmem:[%s860_s5 + $0x60] sm:$0xff] (%p759_p4) }
  0xfa   : > { %414 = vst [vmem:[%s860_s5 + $0x70] sm:$0xff] %v359_v35 }
  0xfb   : > { %479 = vst [vmem:[%s902_s9 + $0xc0] sm:$0xff] (%p759_p4), %v478_v1 }
  0xfc   : > { %481 = vst [vmem:[%s902_s9 + $0xc8] sm:$0xff] (%p759_p4), %v480_v2 }
 0x100   : > { %v392_v36 = vpop.trf.xlu1  ;;  %v484_v5 = vld [vmem:[%s860_s5 + $0x78] sm:$0xff] (%p759_p4) }
 0x101   : > { %v360_v37 = vpop.trf.xlu0  ;;  %417 = vst [vmem:[%s860_s5 + $0x88] sm:$0xff] %v392_v36  ;;  %v482_v3 = vld [vmem:[%s860_s5 + $0x70] sm:$0xff] (%p759_p4) }
 0x102   : > { %416 = vst [vmem:[%s860_s5 + $0x80] sm:$0xff] %v360_v37 }
 0x103   : > { %483 = vst [vmem:[%s902_s9 + $0xe0] sm:$0xff] (%p759_p4), %v482_v3 }
 0x104   : > { %485 = vst [vmem:[%s902_s9 + $0xe8] sm:$0xff] (%p759_p4), %v484_v5 }
 0x108   : > { %v393_v38 = vpop.trf.xlu1  ;;  %v488_v7 = vld [vmem:[%s860_s5 + $0x88] sm:$0xff] (%p759_p4) }
 0x109   : > { %v361_v39 = vpop.trf.xlu0  ;;  %419 = vst [vmem:[%s860_s5 + $0x98] sm:$0xff] %v393_v38  ;;  %v486_v6 = vld [vmem:[%s860_s5 + $0x80] sm:$0xff] (%p759_p4) }
 0x10a   : > { %418 = vst [vmem:[%s860_s5 + $0x90] sm:$0xff] %v361_v39 }
 0x10b   : > { %487 = vst [vmem:[%s902_s9 + $0x100] sm:$0xff] (%p759_p4), %v486_v6 }
 0x10c   : > { %489 = vst [vmem:[%s902_s9 + $0x108] sm:$0xff] (%p759_p4), %v488_v7 }
 0x110   : > { %v394_v40 = vpop.trf.xlu1  ;;  %v492_v9 = vld [vmem:[%s860_s5 + $0x98] sm:$0xff] (%p759_p4) }
 0x111   : > { %v362_v41 = vpop.trf.xlu0  ;;  %421 = vst [vmem:[%s860_s5 + $0xa8] sm:$0xff] %v394_v40  ;;  %v490_v8 = vld [vmem:[%s860_s5 + $0x90] sm:$0xff] (%p759_p4) }
 0x112   : > { %420 = vst [vmem:[%s860_s5 + $0xa0] sm:$0xff] %v362_v41 }
 0x113   : > { %491 = vst [vmem:[%s902_s9 + $0x120] sm:$0xff] (%p759_p4), %v490_v8 }
 0x114   : > { %493 = vst [vmem:[%s902_s9 + $0x128] sm:$0xff] (%p759_p4), %v492_v9 }
 0x118   : > { %v395_v42 = vpop.trf.xlu1  ;;  %v496_v11 = vld [vmem:[%s860_s5 + $0xa8] sm:$0xff] (%p759_p4) }
 0x119   : > { %v363_v43 = vpop.trf.xlu0  ;;  %423 = vst [vmem:[%s860_s5 + $0xb8] sm:$0xff] %v395_v42  ;;  %v494_v10 = vld [vmem:[%s860_s5 + $0xa0] sm:$0xff] (%p759_p4) }
 0x11a   : > { %422 = vst [vmem:[%s860_s5 + $0xb0] sm:$0xff] %v363_v43 }
 0x11b   : > { %495 = vst [vmem:[%s902_s9 + $0x140] sm:$0xff] (%p759_p4), %v494_v10 }
 0x11c   : > { %497 = vst [vmem:[%s902_s9 + $0x148] sm:$0xff] (%p759_p4), %v496_v11 }
 0x120   : > { %v396_v44 = vpop.trf.xlu1  ;;  %v500_v13 = vld [vmem:[%s860_s5 + $0xb8] sm:$0xff] (%p759_p4) }
 0x121   : > { %v364_v45 = vpop.trf.xlu0  ;;  %425 = vst [vmem:[%s860_s5 + $0xc8] sm:$0xff] %v396_v44  ;;  %v498_v12 = vld [vmem:[%s860_s5 + $0xb0] sm:$0xff] (%p759_p4) }
 0x122   : > { %424 = vst [vmem:[%s860_s5 + $0xc0] sm:$0xff] %v364_v45 }
 0x123   : > { %499 = vst [vmem:[%s902_s9 + $0x160] sm:$0xff] (%p759_p4), %v498_v12 }
 0x124   : > { %501 = vst [vmem:[%s902_s9 + $0x168] sm:$0xff] (%p759_p4), %v500_v13 }
 0x128   : > { %v397_v46 = vpop.trf.xlu1  ;;  %v504_v15 = vld [vmem:[%s860_s5 + $0xc8] sm:$0xff] (%p759_p4) }
 0x129   : > { %v365_v47 = vpop.trf.xlu0  ;;  %427 = vst [vmem:[%s860_s5 + $0xd8] sm:$0xff] %v397_v46  ;;  %v502_v14 = vld [vmem:[%s860_s5 + $0xc0] sm:$0xff] (%p759_p4) }
 0x12a   : > { %426 = vst [vmem:[%s860_s5 + $0xd0] sm:$0xff] %v365_v47 }
 0x12b   : > { %503 = vst [vmem:[%s902_s9 + $0x180] sm:$0xff] (%p759_p4), %v502_v14 }
 0x12c   : > { %505 = vst [vmem:[%s902_s9 + $0x188] sm:$0xff] (%p759_p4), %v504_v15 }
 0x130   : > { %v398_v48 = vpop.trf.xlu1  ;;  %v508_v17 = vld [vmem:[%s860_s5 + $0xd8] sm:$0xff] (%p759_p4) }
 0x131   : > { %v366_v49 = vpop.trf.xlu0  ;;  %429 = vst [vmem:[%s860_s5 + $0xe8] sm:$0xff] %v398_v48  ;;  %v506_v16 = vld [vmem:[%s860_s5 + $0xd0] sm:$0xff] (%p759_p4) }
 0x132   : > { %428 = vst [vmem:[%s860_s5 + $0xe0] sm:$0xff] %v366_v49 }
 0x133   : > { %507 = vst [vmem:[%s902_s9 + $0x1a0] sm:$0xff] (%p759_p4), %v506_v16 }
 0x134   : > { %509 = vst [vmem:[%s902_s9 + $0x1a8] sm:$0xff] (%p759_p4), %v508_v17 }
 0x136   : > { %438 = sbr.rel (!%p759_p4) target bundleno = 323 (0x143), region = 36 }
 0x138   : > { %v399_v50 = vpop.trf.xlu1  ;;  %v512_v19 = vld [vmem:[%s860_s5 + $0xe8] sm:$0xff] (%p759_p4) }
 0x139   : > { %v367_v51 = vpop.trf.xlu0  ;;  %431 = vst [vmem:[%s860_s5 + $0xf8] sm:$0xff] %v399_v50  ;;  %v510_v18 = vld [vmem:[%s860_s5 + $0xe0] sm:$0xff] (%p759_p4) }
 0x13a   : > { %430 = vst [vmem:[%s860_s5 + $0xf0] sm:$0xff] %v367_v51 }
 0x13b   : > { %511 = vst [vmem:[%s902_s9 + $0x1c0] sm:$0xff] %v510_v18 }
 0x13c   : > { %513 = vst [vmem:[%s902_s9 + $0x1c8] sm:$0xff] %v512_v19 }
 0x140   : > { %v516_v21 = vld [vmem:[%s860_s5 + $0xf8] sm:$0xff] }
 0x141   : > { %v514_v20 = vld [vmem:[%s860_s5 + $0xf0] sm:$0xff]  ;;  %517 = vst [vmem:[%s902_s9 + $0x1e8] sm:$0xff] %v516_v21 }
 0x142   : > { %515 = vst [vmem:[%s902_s9 + $0x1e0] sm:$0xff] %v514_v20 }
 0x143 PF: > { %p10_p8 = scmp.ge.s32.totalorder %s749_s16, 4   ;;  %s981_s12 = smov %s708_s13 }
 0x144   : > { %s982_s13 = smov %s757_s19  ;;  %s983_s14 = smov %s749_s16 }
 0x145   :  { %12 = sbr.rel (!%p10_p8) target bundleno = 2 (0x2), region = 85 }

// kernel: conv_block_forward.2
= control target key start
LH: loop header
LB: loop body
LE: loop exit
PB: predicated region body
PF: predicated region fallthrough
CT: control target
= control target key end

     0   :  { %s1134_s12 = smov 0   ;;  %s1136_s13 = smov 0   ;;  %s1362_s0 = inlined_call_operand.vmem [shape: bf16[512,128], index: 0, kind: input, shape index: {}]   ;;  %s1363_s1 = inlined_call_operand.vmem [shape: bf16[128,128], index: 1, kind: input, shape index: {}]   ;;  %s1364_s2 = inlined_call_operand.vmem [shape: bf16[512,128], index: 2, kind: output, shape index: {0}]   ;;  %s1365_s3 = inlined_call_operand.vmem [shape: f32[2,2,128], index: 3, kind: output, shape index: {1}]  }
   0x1   :  { %s1138_s14 = smov 0  }
   0x2 LB: > { %s23_s15 = sadd.s32 1, %s1108_s13  ;;  %p819_p0 = scmp.ge.s32.totalorder %s1112_s14, 1  ;;  %s1112_s14 = sphi %s1138_s14, %s14_s14   ;;  %s1108_s13 = sphi %s1136_s13, %s1367_s13   ;;  %s1104_s12 = sphi %s1134_s12, %s1366_s12  }
   0x3   : > { %p24_p1 = scmp.ge.s32.totalorder %s23_s15, 2  ;;  %p166_p2 = scmp.lt.s32.totalorder %s1112_s14, 3 }
   0x5   : > { %s1369_s15 = smov (%p24_p1, %s23_s15), 0  ;;  %p167_p3 = pnand %p819_p0, %p166_p2 }
   0x6   : > { %s820_s24 = sshll.u32 (!%p167_p3), %s1104_s12, 5  ;;  %p223_p5 = scmp.lt.s32.totalorder (!%p167_p3), %s1104_s12, 1 }
   0x7   : > { %170 = sbr.rel (%p167_p3) target bundleno = 291 (0x123), region = 28  ;;  %p205_p4 = scmp.lt.s32.totalorder (!%p167_p3), %s820_s24, 63 }
   0xc   : > { %v946_v0 = vld [vmem:[%s1363_s1 + $0x38] sm:$0xff]  ;;  %v945_v1 = vld [vmem:[%s1363_s1 + $0x30] sm:$0xff]  ;;  %v944_v2 = vld [vmem:[%s1363_s1 + $0x28] sm:$0xff]  ;;  %s1371_s24 = smov (!%p205_p4, %s820_s24), 63  ;;  %s1373_s12 = smov (!%p223_p5, %s1104_s12), 1 }
   0xd   : > { %422 = vmatpush.bf16.msra.mxu0 %v946_v0  ;;  %1042 = vmatpush.bf16.msra.mxu1 %v946_v0  ;;  %v943_v3 = vld [vmem:[%s1363_s1 + $0x20] sm:$0xff]  ;;  %v942_v4 = vld [vmem:[%s1363_s1 + $0x18] sm:$0xff]  ;;  %v941_v5 = vld [vmem:[%s1363_s1 + $0x10] sm:$0xff]  ;;  %s821_s4 = sshll.u32 %s1371_s24, 2  ;;  %s824_s17 = sshll.u32 %s1373_s12, 1 }
   0xe   : > { %1043 = vmatpush.bf16.msra.mxu2 %v946_v0  ;;  %1044 = vmatpush.bf16.msra.mxu3 %v946_v0  ;;  %v940_v6 = vld [vmem:[%s1363_s1 + $0x8] sm:$0xff]  ;;  %v939_v7 = vld [vmem:[%s1363_s1] sm:$0xff]  ;;  %s1187_s9 = scalar_lea.vmem %s1362_s0, %s821_s4  ;;  %s1214_s16 = scalar_lea.vmem %s1364_s2, %s821_s4 }
   0xf   : > { %v923_v8 = vld [vmem:[%s1187_s9] sm:$0xff]  ;;  %v924_v12 = vld [vmem:[%s1187_s9 + $0x8] sm:$0xff]  ;;  %v925_v16 = vld [vmem:[%s1187_s9 + $0x10] sm:$0xff]  ;;  %s229_s20 = scalar_lea.vmem %s1365_s3, %s824_s17 }
  0x10   : > { %v927_v9 = vld [vmem:[%s1187_s9 + $0x20] sm:$0xff]  ;;  %v928_v13 = vld [vmem:[%s1187_s9 + $0x28] sm:$0xff]  ;;  %v929_v17 = vld [vmem:[%s1187_s9 + $0x30] sm:$0xff] }
  0x11   : > { %423 = vmatpush.bf16.msra.mxu0 %v945_v1  ;;  %1045 = vmatpush.bf16.msra.mxu1 %v945_v1  ;;  %v931_v10 = vld [vmem:[%s1187_s9 + $0x40] sm:$0xff]  ;;  %v932_v14 = vld [vmem:[%s1187_s9 + $0x48] sm:$0xff]  ;;  %v933_v18 = vld [vmem:[%s1187_s9 + $0x50] sm:$0xff] }
  0x12   : > { %1046 = vmatpush.bf16.msra.mxu2 %v945_v1  ;;  %1047 = vmatpush.bf16.msra.mxu3 %v945_v1  ;;  %v935_v11 = vld [vmem:[%s1187_s9 + $0x60] sm:$0xff]  ;;  %v936_v15 = vld [vmem:[%s1187_s9 + $0x68] sm:$0xff]  ;;  %v937_v19 = vld [vmem:[%s1187_s9 + $0x70] sm:$0xff] }
  0x13   : > { %v926_v20 = vld [vmem:[%s1187_s9 + $0x18] sm:$0xff] }
  0x14   : > { %v930_v21 = vld [vmem:[%s1187_s9 + $0x38] sm:$0xff] }
  0x15   : > { %424 = vmatpush.bf16.msra.mxu0 %v944_v2  ;;  %1048 = vmatpush.bf16.msra.mxu1 %v944_v2  ;;  %v934_v22 = vld [vmem:[%s1187_s9 + $0x58] sm:$0xff] }
  0x16   : > { %1049 = vmatpush.bf16.msra.mxu2 %v944_v2  ;;  %1050 = vmatpush.bf16.msra.mxu3 %v944_v2  ;;  %v938_v23 = vld [vmem:[%s1187_s9 + $0x78] sm:$0xff] }
  0x19   : > { %425 = vmatpush.bf16.msra.mxu0 %v943_v3  ;;  %1051 = vmatpush.bf16.msra.mxu1 %v943_v3 }
  0x1a   : > { %1052 = vmatpush.bf16.msra.mxu2 %v943_v3  ;;  %1053 = vmatpush.bf16.msra.mxu3 %v943_v3 }
  0x1d   : > { %426 = vmatpush.bf16.msra.mxu0 %v942_v4  ;;  %1054 = vmatpush.bf16.msra.mxu1 %v942_v4 }
  0x1e   : > { %1055 = vmatpush.bf16.msra.mxu2 %v942_v4  ;;  %1056 = vmatpush.bf16.msra.mxu3 %v942_v4 }
  0x21   : > { %427 = vmatpush.bf16.msra.mxu0 %v941_v5  ;;  %1057 = vmatpush.bf16.msra.mxu1 %v941_v5 }
  0x22   : > { %1058 = vmatpush.bf16.msra.mxu2 %v941_v5  ;;  %1059 = vmatpush.bf16.msra.mxu3 %v941_v5 }
  0x25   : > { %428 = vmatpush.bf16.msra.mxu0 %v940_v6  ;;  %1060 = vmatpush.bf16.msra.mxu1 %v940_v6 }
  0x26   : > { %1061 = vmatpush.bf16.msra.mxu2 %v940_v6  ;;  %1062 = vmatpush.bf16.msra.mxu3 %v940_v6 }
  0x29   : > { %429 = vmatpush.bf16.msra.mxu0 %v939_v7  ;;  %1063 = vmatpush.bf16.msra.mxu1 %v939_v7 }
  0x2a   : > { %1064 = vmatpush.bf16.msra.mxu2 %v939_v7  ;;  %1065 = vmatpush.bf16.msra.mxu3 %v939_v7 }
  0x2c   : > { %430 = vmatmul.bf16.vlgmr.msra.gmra.mxu0 %v923_v8  ;;  %450 = vmatmul.bf16.vlgmr.msra.gmra.mxu1 %v927_v9 }
  0x2d   : > { %470 = vmatmul.bf16.vlgmr.msra.gmra.mxu2 %v931_v10  ;;  %490 = vmatmul.bf16.vlgmr.msra.gmra.mxu3 %v935_v11 }
  0x3c   : > { %435 = vmatmul.bf16.gmra.mxu0 %v924_v12  ;;  %455 = vmatmul.bf16.gmra.mxu1 %v928_v13 }
  0x3d   : > { %475 = vmatmul.bf16.gmra.mxu2 %v932_v14  ;;  %495 = vmatmul.bf16.gmra.mxu3 %v936_v15 }
  0x4c   : > { %440 = vmatmul.bf16.gmra.mxu0 %v925_v16  ;;  %460 = vmatmul.bf16.gmra.mxu1 %v929_v17 }
  0x4d   : > { %480 = vmatmul.bf16.gmra.mxu2 %v933_v18  ;;  %500 = vmatmul.bf16.gmra.mxu3 %v937_v19 }
  0x5c   : > { %445 = vmatmul.bf16.gmra.mxu0 %v926_v20  ;;  %465 = vmatmul.bf16.gmra.mxu1 %v930_v21 }
  0x5d   : > { %485 = vmatmul.bf16.gmra.mxu2 %v934_v22  ;;  %505 = vmatmul.bf16.gmra.mxu3 %v938_v23 }
  0xa9   : > { %v431_v24 = vpop.f32.mrf.mxu0  ;;  %v1205_v25 = vpop.f32.mrf.mxu1 }
  0xaa   : > { %v549_v57 = vmul.f32 %v431_v24, %v431_v24 }
  0xb0   : > { %v1207_v26 = vpop.f32.mrf.mxu2  ;;  %v1218_v30 = vpop.f32.mrf.mxu3 }
  0xb1   : > { %v433_v27 = vpop.f32.mrf.mxu0  ;;  %v1216_v28 = vpop.f32.mrf.mxu1 }
  0xb2   : > { %v950_v29 = vpack.c.bf16 %v433_v27, %v431_v24  ;;  %v970_v31 = vpack.c.bf16 %v1216_v28, %v1205_v25  ;;  %v550_v56 = vmul.f32 %v433_v27, %v433_v27  ;;  %v511_v58 = vadd.f32 %v433_v27, %v431_v24 }
  0xb3   : > { %v557_v27 = vmul.f32 %v1205_v25, %v1205_v25 }
  0xb4   : > { %951 = vst [vmem:[%s1214_s16] sm:$0xff] %v950_v29   ;;  %v581_v60 = vadd.f32 %v550_v56, %v549_v57 }
  0xb5   : > { %1030 = vst [vmem:[%s1214_s16 + $0x20] sm:$0xff] %v970_v31  }
  0xb8   : > { %v1224_v32 = vpop.f32.mrf.mxu2  ;;  %v1230_v36 = vpop.f32.mrf.mxu3 }
  0xb9   : > { %v436_v33 = vpop.f32.mrf.mxu0  ;;  %v1226_v34 = vpop.f32.mrf.mxu1  ;;  %v990_v35 = vpack.c.bf16 %v1224_v32, %v1207_v26  ;;  %v1010_v37 = vpack.c.bf16 %v1230_v36, %v1218_v30 }
  0xba   : > { %v551_v59 = vmul.f32 %v436_v33, %v436_v33  ;;  %v512_v61 = vadd.f32 %v511_v58, %v436_v33 }
  0xbb   : > { %1034 = vst [vmem:[%s1214_s16 + $0x40] sm:$0xff] %v990_v35  }
  0xbc   : > { %1038 = vst [vmem:[%s1214_s16 + $0x60] sm:$0xff] %v1010_v37   ;;  %v582_v3 = vadd.f32 %v581_v60, %v551_v59 }
  0xc0   : > { %v1236_v38 = vpop.f32.mrf.mxu2  ;;  %v1240_v42 = vpop.f32.mrf.mxu3 }
  0xc1   : > { %v438_v39 = vpop.f32.mrf.mxu0  ;;  %v1238_v40 = vpop.f32.mrf.mxu1 }
  0xc2   : > { %v955_v41 = vpack.c.bf16 %v438_v39, %v436_v33  ;;  %v975_v43 = vpack.c.bf16 %v1238_v40, %v1226_v34  ;;  %v552_v62 = vmul.f32 %v438_v39, %v438_v39  ;;  %v513_v4 = vadd.f32 %v512_v61, %v438_v39 }
  0xc3   : > { %v558_v33 = vmul.f32 %v1216_v28, %v1216_v28  ;;  %v559_v39 = vmul.f32 %v1226_v34, %v1226_v34 }
  0xc4   : > { %1027 = vst [vmem:[%s1214_s16 + $0x8] sm:$0xff] %v955_v41   ;;  %v583_v8 = vadd.f32 %v582_v3, %v552_v62  ;;  %v565_v3 = vmul.f32 %v1207_v26, %v1207_v26 }
  0xc5   : > { %1031 = vst [vmem:[%s1214_s16 + $0x28] sm:$0xff] %v975_v43  }
  0xc8   : > { %v1246_v44 = vpop.f32.mrf.mxu2  ;;  %v1252_v48 = vpop.f32.mrf.mxu3 }
  0xc9   : > { %v441_v45 = vpop.f32.mrf.mxu0  ;;  %v1248_v46 = vpop.f32.mrf.mxu1  ;;  %v995_v47 = vpack.c.bf16 %v1246_v44, %v1236_v38  ;;  %v1015_v49 = vpack.c.bf16 %v1252_v48, %v1240_v42 }
  0xca   : > { %v553_v5 = vmul.f32 %v441_v45, %v441_v45  ;;  %v514_v9 = vadd.f32 %v513_v4, %v441_v45 }
  0xcb   : > { %1035 = vst [vmem:[%s1214_s16 + $0x48] sm:$0xff] %v995_v47  }
  0xcc   : > { %1039 = vst [vmem:[%s1214_s16 + $0x68] sm:$0xff] %v1015_v49   ;;  %v584_v11 = vadd.f32 %v583_v8, %v553_v5  ;;  %v566_v5 = vmul.f32 %v1224_v32, %v1224_v32 }
  0xd0   : > { %v1258_v50 = vpop.f32.mrf.mxu2  ;;  %v1262_v54 = vpop.f32.mrf.mxu3 }
  0xd1   : > { %v443_v51 = vpop.f32.mrf.mxu0  ;;  %v1260_v52 = vpop.f32.mrf.mxu1 }
  0xd2   : > { %v960_v53 = vpack.c.bf16 %v443_v51, %v441_v45  ;;  %v980_v55 = vpack.c.bf16 %v1260_v52, %v1248_v46  ;;  %v554_v10 = vmul.f32 %v443_v51, %v443_v51  ;;  %v515_v12 = vadd.f32 %v514_v9, %v443_v51 }
  0xd3   : > { %v562_v57 = vmul.f32 %v1260_v52, %v1260_v52 }
  0xd4   : > { %1028 = vst [vmem:[%s1214_s16 + $0x10] sm:$0xff] %v960_v53   ;;  %v585_v14 = vadd.f32 %v584_v11, %v554_v10  ;;  %v568_v10 = vmul.f32 %v1246_v44, %v1246_v44 }
  0xd5   : > { %1032 = vst [vmem:[%s1214_s16 + $0x30] sm:$0xff] %v980_v55   ;;  %v561_v55 = vmul.f32 %v1248_v46, %v1248_v46 }
  0xd8   : > { %v1268_v63 = vpop.f32.mrf.mxu2  ;;  %v1272_v6 = vpop.f32.mrf.mxu3 }
  0xd9   : > { %v446_v0 = vpop.f32.mrf.mxu0  ;;  %v466_v1 = vpop.f32.mrf.mxu1  ;;  %v1000_v2 = vpack.c.bf16 %v1268_v63, %v1258_v50  ;;  %v1020_v7 = vpack.c.bf16 %v1272_v6, %v1262_v54 }
  0xda   : > { %v555_v13 = vmul.f32 %v446_v0, %v446_v0  ;;  %v516_v15 = vadd.f32 %v515_v12, %v446_v0  ;;  %v563_v60 = vmul.f32 %v466_v1, %v466_v1 }
  0xdb   : > { %1036 = vst [vmem:[%s1214_s16 + $0x50] sm:$0xff] %v1000_v2  }
  0xdc   : > { %1040 = vst [vmem:[%s1214_s16 + $0x70] sm:$0xff] %v1020_v7   ;;  %v586_v19 = vadd.f32 %v585_v14, %v555_v13 }
  0xe0   : > { %v486_v16 = vpop.f32.mrf.mxu2  ;;  %v1278_v23 = vpop.f32.mrf.mxu3 }
  0xe1   : > { %v448_v17 = vpop.f32.mrf.mxu0  ;;  %v468_v18 = vpop.f32.mrf.mxu1 }
  0xe2   : > { %v517_v20 = vadd.f32 %v516_v15, %v448_v17  ;;  %v556_v21 = vmul.f32 %v448_v17, %v448_v17  ;;  %v965_v22 = vpack.c.bf16 %v448_v17, %v446_v0  ;;  %v985_v24 = vpack.c.bf16 %v468_v18, %v466_v1 }
  0xe3   : > { %v564_v2 = vmul.f32 %v468_v18, %v468_v18  ;;  %v570_v15 = vmul.f32 %v1268_v63, %v1268_v63 }
  0xe4   : > { %v518_v29 = vadd.f32 %v517_v20, %v1205_v25  ;;  %v587_v31 = vadd.f32 %v586_v19, %v556_v21  ;;  %1029 = vst [vmem:[%s1214_s16 + $0x18] sm:$0xff] %v965_v22   ;;  %v560_v25 = vmul.f32 %v1238_v40, %v1238_v40  ;;  %v571_v19 = vmul.f32 %v486_v16, %v486_v16 }
  0xe5   : > { %1033 = vst [vmem:[%s1214_s16 + $0x38] sm:$0xff] %v985_v24  }
  0xe6   : > { %v519_v35 = vadd.f32 %v518_v29, %v1216_v28  ;;  %v588_v37 = vadd.f32 %v587_v31, %v557_v27 }
  0xe8   : > { %v520_v41 = vadd.f32 %v519_v35, %v1226_v34  ;;  %v589_v43 = vadd.f32 %v588_v37, %v558_v33  ;;  %v488_v45 = vpop.f32.mrf.mxu2  ;;  %v1294_v53 = vpop.f32.mrf.mxu3  ;;  %v576_v35 = vmul.f32 %v1252_v48, %v1252_v48 }
  0xe9   : > { %v1005_v47 = vpack.c.bf16 %v488_v45, %v486_v16  ;;  %v1025_v28 = vpack.c.bf16 %v1294_v53, %v1278_v23  ;;  %v572_v22 = vmul.f32 %v488_v45, %v488_v45 }
  0xea   : > { %v590_v49 = vadd.f32 %v589_v43, %v559_v39  ;;  %v521_v51 = vadd.f32 %v520_v41, %v1238_v40  ;;  %v577_v39 = vmul.f32 %v1262_v54, %v1262_v54 }
  0xeb   : > { %1037 = vst [vmem:[%s1214_s16 + $0x58] sm:$0xff] %v1005_v47  }
  0xec   : > { %v522_v34 = vadd.f32 %v521_v51, %v1248_v46  ;;  %v591_v56 = vadd.f32 %v590_v49, %v560_v25  ;;  %1041 = vst [vmem:[%s1214_s16 + $0x78] sm:$0xff] %v1025_v28   ;;  %v579_v49 = vmul.f32 %v1278_v23, %v1278_v23 }
  0xee   : > { %v523_v58 = vadd.f32 %v522_v34, %v1260_v52  ;;  %v592_v59 = vadd.f32 %v591_v56, %v561_v55  ;;  %v567_v52 = vmul.f32 %v1236_v38, %v1236_v38 }
  0xf0   : > { %v524_v40 = vadd.f32 %v523_v58, %v466_v1  ;;  %v593_v61 = vadd.f32 %v592_v59, %v562_v57 }
  0xf2   : > { %v594_v62 = vadd.f32 %v593_v61, %v563_v60  ;;  %v525_v0 = vadd.f32 %v524_v40, %v468_v18 }
  0xf4   : > { %v526_v4 = vadd.f32 %v525_v0, %v1207_v26  ;;  %v595_v46 = vadd.f32 %v594_v62, %v564_v2  ;;  %v569_v26 = vmul.f32 %v1258_v50, %v1258_v50 }
  0xf6   : > { %v527_v7 = vadd.f32 %v526_v4, %v1224_v32  ;;  %v596_v8 = vadd.f32 %v595_v46, %v565_v3 }
  0xf8   : > { %v528_v1 = vadd.f32 %v527_v7, %v1236_v38  ;;  %v597_v9 = vadd.f32 %v596_v8, %v566_v5 }
  0xfa   : > { %v598_v11 = vadd.f32 %v597_v9, %v567_v52  ;;  %v529_v12 = vadd.f32 %v528_v1, %v1246_v44  ;;  %v573_v44 = vmul.f32 %v1218_v30, %v1218_v30 }
  0xfc   : > { %v530_v13 = vadd.f32 %v529_v12, %v1258_v50  ;;  %v599_v14 = vadd.f32 %v598_v11, %v568_v10  ;;  %v574_v50 = vmul.f32 %v1230_v36, %v1230_v36 }
  0xfe   : > { %v531_v32 = vadd.f32 %v530_v13, %v1268_v63  ;;  %v600_v17 = vadd.f32 %v599_v14, %v569_v26  ;;  %v575_v63 = vmul.f32 %v1240_v42, %v1240_v42 }
 0x100   : > { %v601_v38 = vadd.f32 %v600_v17, %v570_v15  ;;  %v532_v18 = vadd.f32 %v531_v32, %v486_v16 }
 0x102   : > { %v602_v20 = vadd.f32 %v601_v38, %v571_v19  ;;  %v533_v21 = vadd.f32 %v532_v18, %v488_v45  ;;  %v578_v45 = vmul.f32 %v1272_v6, %v1272_v6 }
 0x104   : > { %v534_v24 = vadd.f32 %v533_v21, %v1218_v30  ;;  %v603_v27 = vadd.f32 %v602_v20, %v572_v22 }
 0x106   : > { %v535_v29 = vadd.f32 %v534_v24, %v1230_v36  ;;  %v604_v31 = vadd.f32 %v603_v27, %v573_v44 }
 0x108   : > { %v536_v16 = vadd.f32 %v535_v29, %v1240_v42  ;;  %v605_v33 = vadd.f32 %v604_v31, %v574_v50 }
 0x10a   : > { %v606_v37 = vadd.f32 %v605_v33, %v575_v63  ;;  %v537_v30 = vadd.f32 %v536_v16, %v1252_v48 }
 0x10c   : > { %v538_v36 = vadd.f32 %v537_v30, %v1262_v54  ;;  %v607_v41 = vadd.f32 %v606_v37, %v576_v35  ;;  %v580_v54 = vmul.f32 %v1294_v53, %v1294_v53 }
 0x10e   : > { %v539_v43 = vadd.f32 %v538_v36, %v1272_v6  ;;  %v608_v42 = vadd.f32 %v607_v41, %v577_v39 }
 0x110   : > { %v609_v47 = vadd.f32 %v608_v42, %v578_v45  ;;  %v540_v25 = vadd.f32 %v539_v43, %v1278_v23 }
 0x112   : > { %v610_v48 = vadd.f32 %v609_v47, %v579_v49  ;;  %v541_v51 = vadd.f32 %v540_v25, %v1294_v53 }
 0x114   : > { %v542_v28 = vrot.slane %v541_v51, 4  ;;  %v611_v55 = vadd.f32 %v610_v48, %v580_v54 }
 0x116   : > { %v543_v34 = vadd.f32 %v542_v28, %v541_v51  ;;  %v612_v56 = vrot.slane %v611_v55, 4 }
 0x118   : > { %v544_v6 = vrot.slane %v543_v34, 2  ;;  %v613_v57 = vadd.f32 %v612_v56, %v611_v55 }
 0x11a   : > { %v545_v58 = vadd.f32 %v544_v6, %v543_v34  ;;  %v614_v59 = vrot.slane %v613_v57, 2 }
 0x11c   : > { %v546_v40 = vrot.slane %v545_v58, 1  ;;  %v615_v60 = vadd.f32 %v614_v59, %v613_v57 }
 0x11e   : > { %v547_v23 = vadd.f32 %v546_v40, %v545_v58  ;;  %v616_v61 = vrot.slane %v615_v60, 1 }
 0x120   : > { %548 = vst [vmem:[%s229_s20] sm:$0x1] %v547_v23  ;;  %v617_v53 = vadd.f32 %v616_v61, %v615_v60 }
 0x122   : > { %618 = vst [vmem:[%s229_s20 + $0x1] sm:$0x1] %v617_v53 }
 0x123 PF: > { %s14_s14 = sadd.s32 1, %s1112_s14   ;;  %s1366_s12 = smov %s1108_s13 }
 0x124   : > { %p11_p6 = scmp.ge.s32.totalorder %s14_s14, 4   ;;  %s1367_s13 = smov %s1369_s15 }
 0x126   :  { %13 = sbr.rel (!%p11_p6) target bundleno = 2 (0x2), region = 73 }

</bundles_post_ra>
